<compile_context>
chip_gen: v5e
topology: v5e:2x2
jax: 0.10.0
libtpu: 0.0.40
codegen_flags: <defaults>
</compile_context>

<pallas_src>
import jax
import jax.numpy as jnp
from jax.experimental import pallas as pl
from jax.experimental.pallas import tpu as pltpu


def ebm_kernel(x_ref, w1_ref, b1_ref, w2_ref, b2_ref, w3_ref, delta_ref,
               b3_ref, out_ref):
    """One batch tile of: net(x) + Bernoulli(mean).log_prob(x).sum(-1).

    x_ref:    (TB, D)  bf16 (binary values, exact)
    w1_ref:   (D, Hp)  bf16    b1_ref: (1, Hp) f32
    w2_ref:   (Hp, Hp) bf16    b2_ref: (1, Hp) f32
    w3_ref:   (1, Hp)  f32     delta_ref: (1, D) f32  (logit(mean))
    b3_ref:   (1,)     f32 SMEM scalar  (b3 + sum(log1p(-mean)))
    out_ref:  (TB, 1)  f32
    """
    x_bf = x_ref[...]                               # (TB, D) bf16

    # --- energy net: D -> Hp -> Hp -> 1 (ReLU MLP); bf16 MXU, f32 accumulate ---
    h = jnp.dot(x_bf, w1_ref[...], preferred_element_type=jnp.float32)
    h = jnp.maximum(h + b1_ref[...], 0.0).astype(jnp.bfloat16)
    h = jnp.dot(h, w2_ref[...], preferred_element_type=jnp.float32)
    h = jnp.maximum(h + b2_ref[...], 0.0)           # (TB, Hp) f32
    # N=1 output projection off the MXU: VPU multiply + XLU lane reduce.
    logp = jnp.sum(h * w3_ref[...], axis=-1, keepdims=True)

    # --- folded Bernoulli base log-prob ---
    # sum(x*log(m) + (1-x)*log1p(-m)) = sum(x * logit(m)) + sum(log1p(-m));
    # the constant term is folded into the SMEM scalar b3_ref.
    bd = jnp.sum(x_bf.astype(jnp.float32) * delta_ref[...],
                 axis=-1, keepdims=True)

    out_ref[...] = logp + bd + b3_ref[0]


def prepare_ebm_params(params, mean):
    """One-time parameter prep (pad / cast / fold).  Call once, reuse per forward."""
    w1, b1, w2, b2, w3, b3 = params
    D, H = w1.shape

    # Hp: lane-full.  Keep 128 for small H (no wasted FLOPs); align to 256 for
    # larger H so the Hp x Hp matmul fills the 2x256x256 MXUs on v6e / v7x.
    Hp = 128 if H <= 128 else ((H + 255) // 256) * 256
    pad_h = Hp - H

    # Saturation-safe mean (matches torch probs_to_logits eps clamp).
    eps = jnp.float32(1.1920929e-07)
    mean_c = jnp.clip(mean.astype(jnp.float32), eps, 1.0 - eps)
    log1m = jnp.log1p(-mean_c)
    delta = (jnp.log(mean_c) - log1m).reshape(1, D)            # logit(mean)
    bd_const = jnp.sum(log1m)                                  # folded into b3

    # Padded units are exact no-ops: zero weights/bias -> 0 through ReLU -> zero
    # output weight.  bf16 weights for the MXU path; f32 biases / row weights.
    w1p = jnp.pad(w1, ((0, 0), (0, pad_h))).astype(jnp.bfloat16)        # (D, Hp)
    b1p = jnp.pad(b1.reshape(1, H), ((0, 0), (0, pad_h))).astype(jnp.float32)
    w2p = jnp.pad(w2, ((0, pad_h), (0, pad_h))).astype(jnp.bfloat16)    # (Hp, Hp)
    b2p = jnp.pad(b2.reshape(1, H), ((0, 0), (0, pad_h))).astype(jnp.float32)
    w3row = jnp.pad(w3.reshape(1, H), ((0, 0), (0, pad_h))).astype(jnp.float32)
    b3adj = (b3.reshape(-1)[0] + bd_const).reshape(1).astype(jnp.float32)

    return dict(w1=w1p, b1=b1p, w2=w2p, b2=b2p, w3=w3row, delta=delta,
                b3=b3adj, D=D, Hp=Hp)


def ebm_forward(x, prepped, *, tile_b=1024):
    """x: (B, D) float in {0,1}.  prepped: output of prepare_ebm_params.
    Returns (B,) float32 == net(x).squeeze() + Bernoulli(mean).log_prob(x).sum(-1)."""
    B, D = x.shape
    assert D == prepped["D"], (D, prepped["D"])
    Hp = prepped["Hp"]

    # bf16 stream of x (exact for binary data): halves HBM traffic per tile.
    x_bf = x.astype(jnp.bfloat16)

    # --- generation-aware VMEM budget (per TensorCore on v7x) ---
    try:
        vmem_cap = pltpu.get_tpu_info().vmem_capacity_bytes
    except Exception:
        vmem_cap = 64 << 20           # conservative: v7x per-TC VMEM
    budget = int(0.7 * vmem_cap)

    def vmem_est(tb_):
        return (2 * tb_ * D * 2                       # x blocks (bf16, double-buffered)
                + 2 * tb_ * 4                         # out blocks (f32, double-buffered)
                + 2 * (D * Hp + Hp * Hp) * 2          # w1, w2 (bf16, default buffering)
                + 2 * (3 * Hp + D) * 4)               # b1, b2, w3row, delta (f32)

    # --- tile sizing: large batch tiles, multiple of 16 (bf16 sublane pack),
    #     no padding of x; ragged tail handled by the grid's edge block. ---
    if B <= tile_b:
        tb = B                                        # single tile (full dim allowed)
    else:
        tb = max(16, (min(int(tile_b), B) // 16) * 16)
        while tb > 16 and vmem_est(tb) > budget:      # auto-shrink if VMEM-tight
            tb = max(16, ((tb // 2) // 16) * 16)
    num_tiles = (B + tb - 1) // tb

    est = vmem_est(tb)
    vmem_limit = max(min(int(1.25 * est) + (8 << 20), budget), est + (2 << 20))

    res = lambda shape: pl.BlockSpec(shape, lambda i: (0,) * len(shape))

    out = pl.pallas_call(
        ebm_kernel,
        out_shape=jax.ShapeDtypeStruct((B, 1), jnp.float32),
        grid=(num_tiles,),
        in_specs=[
            # x streams per tile; the last block may extend past B: its garbage
            # rows stay row-local and their outputs are masked / never used.
            pl.BlockSpec((tb, D), lambda i: (i, 0)),
            res((D, Hp)),                              # w1 (bf16, resident)
            res((1, Hp)),                              # b1
            res((Hp, Hp)),                             # w2 (bf16, resident)
            res((1, Hp)),                              # b2
            res((1, Hp)),                              # w3 as row (f32)
            res((1, D)),                               # delta = logit(mean)
            pl.BlockSpec(memory_space=pltpu.MemorySpace.SMEM),   # b3 + const
        ],
        out_specs=pl.BlockSpec((tb, 1), lambda i: (i, 0)),
        compiler_params=pltpu.CompilerParams(
            # "parallel" batch axis -> shards across the 2 TCs on v7x (megacore).
            dimension_semantics=("parallel",),
            vmem_limit_bytes=int(vmem_limit)),
    )(x_bf, prepped["w1"], prepped["b1"], prepped["w2"], prepped["b2"],
      prepped["w3"], prepped["delta"], prepped["b3"])

    return out[:, 0]


def reference_forward(x, params, mean):
    """Pure-JAX f32 reference of the PyTorch forward (binary case)."""
    w1, b1, w2, b2, w3, b3 = params
    eps = jnp.float32(1.1920929e-07)
    mean_c = jnp.clip(mean, eps, 1.0 - eps)
    h = jnp.maximum(x @ w1 + b1, 0.0)
    h = jnp.maximum(h @ w2 + b2, 0.0)
    logp = (h @ w3 + b3).squeeze(-1)
    bd = jnp.sum(x * jnp.log(mean_c) + (1.0 - x) * jnp.log1p(-mean_c), axis=-1)
    return logp + bd


if __name__ == "__main__":
    # Small shapes; B chosen so the demo exercises a multi-step grid WITH a
    # ragged tail (40 = 2*16 + 8), and H=48 exercises the Hp=128 padding.
    B, D, H = 40, 32, 48
    key = jax.random.PRNGKey(0)
    k_x, k_m, k1, k2, k3, kb1, kb2 = jax.random.split(key, 7)

    # Deterministic synthetic parameters for the energy net (D -> H -> H -> 1).
    w1 = jax.random.normal(k1, (D, H), jnp.float32) * (1.0 / jnp.sqrt(D))
    b1 = 0.1 * jax.random.normal(kb1, (1, H), jnp.float32)
    w2 = jax.random.normal(k2, (H, H), jnp.float32) * (1.0 / jnp.sqrt(H))
    b2 = 0.1 * jax.random.normal(kb2, (1, H), jnp.float32)
    w3 = jax.random.normal(k3, (H, 1), jnp.float32) * (1.0 / jnp.sqrt(H))
    b3 = jnp.ones((1, 1), jnp.float32) * 0.3
    params = (w1, b1, w2, b2, w3, b3)

    # Bernoulli base-distribution mean in (0, 1).
    mean = 0.25 + 0.5 * jax.random.uniform(k_m, (D,), jnp.float32)

    # Binary input data x in {0, 1}.
    x = (jax.random.uniform(k_x, (B, D), jnp.float32) > 0.5).astype(jnp.float32)

    # One-time param prep, then the fused forward.  tile_b=16 here only so the
    # demo exercises a 3-step pipeline with a ragged tail; production keeps the
    # default tile_b=1024 (sweep 512/1024/2048).
    prepped = prepare_ebm_params(params, mean)
    out = ebm_forward(x, prepped, tile_b=16)
    out = jax.block_until_ready(out)

    ref = reference_forward(x, params, mean)
    assert out.shape == (B,)
    # bf16 weights/activations in the kernel vs f32 reference -> loosened tolerance
    # (intentional precision contract for EBM energies).
    assert jnp.allclose(out, ref, atol=1e-1, rtol=1e-2), (out, ref)

    # TODO(synk): non-binary (OneHotCategorical) base distribution and the
    # mean=None (bd == 0) path are not implemented; this covers is_binary=True
    # with a provided mean, which is the EBM.forward path exercised in training.
    print("KERNEL_OK")
</pallas_src>

<mosaic_0001>
module attributes {stable_mosaic.version = 11 : i64} {
  func.func @ebm_kernel(%arg0: i32, %arg1: memref<16x32xbf16, #tpu.memory_space<vmem>>, %arg2: memref<32x128xbf16, #tpu.memory_space<vmem>>, %arg3: memref<1x128xf32, #tpu.memory_space<vmem>>, %arg4: memref<128x128xbf16, #tpu.memory_space<vmem>>, %arg5: memref<1x128xf32, #tpu.memory_space<vmem>>, %arg6: memref<1x128xf32, #tpu.memory_space<vmem>>, %arg7: memref<1x32xf32, #tpu.memory_space<vmem>>, %arg8: memref<1xf32, #tpu.memory_space<smem>>, %arg9: memref<16x1xf32, #tpu.memory_space<vmem>>) attributes {dimension_semantics = [#tpu.dimension_semantics<parallel>], iteration_bounds = array<i64: 3>, scalar_prefetch = 0 : i64, scratch_operands = 0 : i64, tpu.core_type = #tpu.core_type<tc>, window_params = [{transform_indices = @transform_0, window_bounds = array<i64: 16, 32>}, {pipeline_mode = #tpu.pipeline_mode<synchronous>, transform_indices = @transform_1, window_bounds = array<i64: 32, 128>}, {pipeline_mode = #tpu.pipeline_mode<synchronous>, transform_indices = @transform_2, window_bounds = array<i64: 1, 128>}, {pipeline_mode = #tpu.pipeline_mode<synchronous>, transform_indices = @transform_3, window_bounds = array<i64: 128, 128>}, {pipeline_mode = #tpu.pipeline_mode<synchronous>, transform_indices = @transform_4, window_bounds = array<i64: 1, 128>}, {pipeline_mode = #tpu.pipeline_mode<synchronous>, transform_indices = @transform_5, window_bounds = array<i64: 1, 128>}, {pipeline_mode = #tpu.pipeline_mode<synchronous>, transform_indices = @transform_6, window_bounds = array<i64: 1, 32>}, {transform_indices = @transform_7, window_bounds = array<i64: 1>}, {transform_indices = @transform_8, window_bounds = array<i64: 16, 1>}]} {
    %c0 = arith.constant 0 : index
    %c0_0 = arith.constant 0 : index
    %0 = vector.load %arg1[%c0, %c0_0] : memref<16x32xbf16, #tpu.memory_space<vmem>>, vector<16x32xbf16>
    %c0_1 = arith.constant 0 : index
    %c0_2 = arith.constant 0 : index
    %1 = vector.load %arg2[%c0_1, %c0_2] : memref<32x128xbf16, #tpu.memory_space<vmem>>, vector<32x128xbf16>
    %cst = arith.constant dense<0.000000e+00> : vector<16x128xf32>
    %2 = tpu.matmul %0, %1, %cst {dimension_numbers = #tpu.dot_dimension_numbers<[1], [0], [0], [1], [0, 0, 1, 1], [], []>} : vector<16x32xbf16>, vector<32x128xbf16>, vector<16x128xf32> -> vector<16x128xf32>
    %c0_3 = arith.constant 0 : index
    %c0_4 = arith.constant 0 : index
    %3 = vector.load %arg3[%c0_3, %c0_4] : memref<1x128xf32, #tpu.memory_space<vmem>>, vector<1x128xf32>
    %4 = vector.broadcast %3 : vector<1x128xf32> to vector<16x128xf32>
    %5 = arith.addf %2, %4 : vector<16x128xf32>
    %cst_5 = arith.constant 0.000000e+00 : f32
    %6 = vector.broadcast %cst_5 : f32 to vector<16x128xf32>
    %7 = arith.maximumf %5, %6 : vector<16x128xf32>
    %8 = arith.truncf %7 : vector<16x128xf32> to vector<16x128xbf16>
    %c0_6 = arith.constant 0 : index
    %c0_7 = arith.constant 0 : index
    %9 = vector.load %arg4[%c0_6, %c0_7] : memref<128x128xbf16, #tpu.memory_space<vmem>>, vector<128x128xbf16>
    %cst_8 = arith.constant dense<0.000000e+00> : vector<16x128xf32>
    %10 = tpu.matmul %8, %9, %cst_8 {dimension_numbers = #tpu.dot_dimension_numbers<[1], [0], [0], [1], [0, 0, 1, 1], [], []>} : vector<16x128xbf16>, vector<128x128xbf16>, vector<16x128xf32> -> vector<16x128xf32>
    %c0_9 = arith.constant 0 : index
    %c0_10 = arith.constant 0 : index
    %11 = vector.load %arg5[%c0_9, %c0_10] : memref<1x128xf32, #tpu.memory_space<vmem>>, vector<1x128xf32>
    %12 = vector.broadcast %11 : vector<1x128xf32> to vector<16x128xf32>
    %13 = arith.addf %10, %12 : vector<16x128xf32>
    %cst_11 = arith.constant 0.000000e+00 : f32
    %14 = vector.broadcast %cst_11 : f32 to vector<16x128xf32>
    %15 = arith.maximumf %13, %14 : vector<16x128xf32>
    %c0_12 = arith.constant 0 : index
    %c0_13 = arith.constant 0 : index
    %16 = vector.load %arg6[%c0_12, %c0_13] : memref<1x128xf32, #tpu.memory_space<vmem>>, vector<1x128xf32>
    %17 = vector.broadcast %16 : vector<1x128xf32> to vector<16x128xf32>
    %18 = arith.mulf %15, %17 : vector<16x128xf32>
    %cst_14 = arith.constant dense<0.000000e+00> : vector<16xf32>
    %19 = vector.multi_reduction <add>, %18, %cst_14 [1] : vector<16x128xf32> to vector<16xf32>
    %20 = vector.shape_cast %19 : vector<16xf32> to vector<16x1xf32>
    %21 = arith.extf %0 : vector<16x32xbf16> to vector<16x32xf32>
    %c0_15 = arith.constant 0 : index
    %c0_16 = arith.constant 0 : index
    %22 = vector.load %arg7[%c0_15, %c0_16] : memref<1x32xf32, #tpu.memory_space<vmem>>, vector<1x32xf32>
    %23 = vector.broadcast %22 : vector<1x32xf32> to vector<16x32xf32>
    %24 = arith.mulf %21, %23 : vector<16x32xf32>
    %cst_17 = arith.constant dense<0.000000e+00> : vector<16xf32>
    %25 = vector.multi_reduction <add>, %24, %cst_17 [1] : vector<16x32xf32> to vector<16xf32>
    %26 = vector.shape_cast %25 : vector<16xf32> to vector<16x1xf32>
    %27 = arith.addf %20, %26 : vector<16x1xf32>
    %c0_18 = arith.constant 0 : index
    %28 = memref.load %arg8[%c0_18] : memref<1xf32, #tpu.memory_space<smem>>
    %29 = vector.broadcast %28 : f32 to vector<16x1xf32>
    %30 = arith.addf %27, %29 : vector<16x1xf32>
    %c0_19 = arith.constant 0 : index
    %c0_20 = arith.constant 0 : index
    %31 = vector.load %arg9[%c0_19, %c0_20] : memref<16x1xf32, #tpu.memory_space<vmem>>, vector<16x1xf32>
    tpu.vector_store %arg9[%c0_19, %c0_20], %30 {strides = array<i32>} : memref<16x1xf32, #tpu.memory_space<vmem>>, vector<16x1xf32>,
    return
  }
  func.func @transform_0(%arg0: i32) -> (i32, i32) {
    %c0_i32 = arith.constant 0 : i32
    %c0_i32_0 = arith.constant 0 : i32
    return %arg0, %c0_i32 : i32, i32
  }
  func.func @transform_1(%arg0: i32) -> (i32, i32) {
    %c0_i32 = arith.constant 0 : i32
    %c0_i32_0 = arith.constant 0 : i32
    %c0_i32_1 = arith.constant 0 : i32
    return %c0_i32, %c0_i32_0 : i32, i32
  }
  func.func @transform_2(%arg0: i32) -> (i32, i32) {
    %c0_i32 = arith.constant 0 : i32
    %c0_i32_0 = arith.constant 0 : i32
    %c0_i32_1 = arith.constant 0 : i32
    return %c0_i32, %c0_i32_0 : i32, i32
  }
  func.func @transform_3(%arg0: i32) -> (i32, i32) {
    %c0_i32 = arith.constant 0 : i32
    %c0_i32_0 = arith.constant 0 : i32
    %c0_i32_1 = arith.constant 0 : i32
    return %c0_i32, %c0_i32_0 : i32, i32
  }
  func.func @transform_4(%arg0: i32) -> (i32, i32) {
    %c0_i32 = arith.constant 0 : i32
    %c0_i32_0 = arith.constant 0 : i32
    %c0_i32_1 = arith.constant 0 : i32
    return %c0_i32, %c0_i32_0 : i32, i32
  }
  func.func @transform_5(%arg0: i32) -> (i32, i32) {
    %c0_i32 = arith.constant 0 : i32
    %c0_i32_0 = arith.constant 0 : i32
    %c0_i32_1 = arith.constant 0 : i32
    return %c0_i32, %c0_i32_0 : i32, i32
  }
  func.func @transform_6(%arg0: i32) -> (i32, i32) {
    %c0_i32 = arith.constant 0 : i32
    %c0_i32_0 = arith.constant 0 : i32
    %c0_i32_1 = arith.constant 0 : i32
    return %c0_i32, %c0_i32_0 : i32, i32
  }
  func.func @transform_7(%arg0: i32) -> i32 {
    %c0_i32 = arith.constant 0 : i32
    %c0_i32_0 = arith.constant 0 : i32
    return %c0_i32 : i32
  }
  func.func @transform_8(%arg0: i32) -> (i32, i32) {
    %c0_i32 = arith.constant 0 : i32
    %c0_i32_0 = arith.constant 0 : i32
    return %arg0, %c0_i32 : i32, i32
  }
}

</mosaic_0001>

<bundles_post_ra>
// kernel: tpu_custom_call.1
= control target key start
LH: loop header
LB: loop body
LE: loop exit
PB: predicated region body
PF: predicated region fallthrough
CT: control target
= control target key end

     0   :  { %s1220_s0 = inlined_call_operand.vmem [shape: bf16[40,32], index: 0, kind: input, shape index: {}]   ;;  %s1221_s1 = inlined_call_operand.vmem [shape: bf16[32,128], index: 1, kind: input, shape index: {}]   ;;  %s1222_s2 = inlined_call_operand.vmem [shape: f32[1,128], index: 2, kind: input, shape index: {}]   ;;  %s1223_s3 = inlined_call_operand.hbm [shape: bf16[128,128], index: 3, kind: input, shape index: {}]   ;;  %s1224_s4 = inlined_call_operand.vmem [shape: f32[1,128], index: 4, kind: input, shape index: {}]   ;;  %s1225_s5 = inlined_call_operand.vmem [shape: f32[1,128], index: 5, kind: input, shape index: {}]   ;;  %s1226_s6 = inlined_call_operand.vmem [shape: f32[1,32], index: 6, kind: input, shape index: {}]   ;;  %s1227_s7 = inlined_call_operand.<no memory space> [shape: f32[1], index: 7, kind: input, shape index: {}]   ;;  %s1228_s8 = inlined_call_operand.vmem [shape: f32[40,1], index: 8, kind: output, shape index: {}]  }
   0x1   :  { %13 = sst [smem:[#allocation2]] %s1227_s7 }
   0x2   :  { %14 = vsyncpa [#allocation4], 0  ;;  %s1106_s29 = smov 0   ;;  %s1108_s30 = smov 0  }
   0x3   :  { %s1110_s9 = smov 0  }
   0x4 LB: > { %s1119_s7 = sadd.s32 4294967295, %s1021_s9   ;;  %s1121_s10 = sadd.s32 1, %s1021_s9   ;;  %s1021_s9 = sphi %s1110_s9, %s1232_s9   ;;  %s1017_s30 = sphi %s1108_s30, %s1231_s30   ;;  %s1013_s29 = sphi %s1106_s29, %s1230_s29  }
   0x5   : > { %s197_s11 = ssub.s32 %s1021_s9, %s1121_s10  ;;  %s200_s12 = sadd.s32 1, %s1017_s30 }
   0x6   : > { %p198_p0 = scmp.eq.s32.totalorder %s197_s11, 0  ;;  %p210_p1 = scmp.ne.s32.totalorder %s1017_s30, %s1013_s29 }
   0x7   : > { %p211_p2 = scmp.eq.s32.totalorder %s1119_s7, 2  ;;  %p744_p3 = scmp.ge.s32.totalorder %s1021_s9, 1 }
   0x8   : > { %s1129_s13 = scalar_select %p198_p0, %s1017_s30, %s200_s12  }
   0x9   : > { %p1131_p4 = por %p211_p2, %p210_p1  ;;  %p224_p5 = scmp.lt.s32.totalorder %s1021_s9, 4 }
   0xa   : > { %p836_p6 = scmp.eq.s32.totalorder %s1119_s7, 0  ;;  %s241_s17 = sshll.u32 %s1223_s3, 4  ;;  %s242_s17 = int_to_ptr.hbm [resolvable:$true] %s241_s17 }
   0xb   : > { %p225_p7 = pnand %p744_p3, %p224_p5  ;;  %s1055_s18 = smov [#allocation3]  }
   0xc   : > { %s243_s19 = sshll.u32 %s1055_s18, 4  ;;  %s1056_s20 = smov 64   ;;  %s244_s19 = int_to_ptr.vmem [resolvable:$true] %s243_s19 }
   0xd   : > { %p832_p8 = pneg %p225_p7  ;;  %s1057_s21 = smov 4  }
   0xe   : > { %288 = sbr.rel (%p225_p7) target bundleno = 468 (0x1d4), region = 52 }
   0xf   : > { %p833_p9 = pnand %p836_p6, %p832_p8 }
  0x11   : > { %835 = dma.hbm_to_vmem [thread:$0]  (!%p833_p9), %s242_s17, 1024, %s244_s19, [#allocation4], %s1056_s20, %s1056_s20, %s1057_s21  }
  0x13   : > { %1008 = dma.done.wait (%p836_p6), [#allocation4], 1024  }
  0x14   : > { %1010 = vsyncadd (%p836_p6), [#allocation4], 4294966272  ;;  %s1146_s22 = sshll.u32 %s1119_s7, 1  ;;  %v816_v0 = vld [vmem:[%s1221_s1 + $0x8] sm:$0xff]  ;;  %v824_v1 = vld [vmem:[#allocation3 + $0x38] sm:$0xff]  ;;  %vm373_vm0 = vcmask 261120  }
  0x15   : > { %p331_p10 = scmp.lt.s32.totalorder %s1146_s22, 4  ;;  %383 = vmatpush.bf16.msra.mxu0 %v816_v0  ;;  %v815_v2 = vld [vmem:[%s1221_s1] sm:$0xff]  ;;  %v823_v3 = vld [vmem:[#allocation3 + $0x30] sm:$0xff]  ;;  %462 = vmatpush.bf16.msra.mxu1 %v824_v1  ;;  %v822_v5 = vld [vmem:[#allocation3 + $0x28] sm:$0xff]  ;;  %s323_s25 = sand.u32 1, %s1013_s29   ;;  %vm508_vm1 = vcmask 7168  }
  0x16   : > { %v821_v6 = vld [vmem:[#allocation3 + $0x20] sm:$0xff]  ;;  %v820_v7 = vld [vmem:[#allocation3 + $0x18] sm:$0xff]  ;;  %v819_v8 = vld [vmem:[#allocation3 + $0x10] sm:$0xff]  ;;  %s749_s26 = sshll.u32 %s323_s25, 4  ;;  %s519_s29 = ssub.s32 (%p1131_p4), 5, %s1146_s22 }
  0x17   : > { %s332_s23 = scalar_select %p331_p10, %s1146_s22, 4  ;;  %v818_v9 = vld [vmem:[#allocation3 + $0x8] sm:$0xff]  ;;  %v817_v10 = vld [vmem:[#allocation3] sm:$0xff] }
  0x18   : > { %v929_v12 = vld [vmem:[%s1222_s2] ss:$0 sm:$0xff]  ;;  %s1175_s27 = scalar_lea.vmem [#allocation5], %s749_s26   ;;  %s825_s28 = sshll.u32 (%p1131_p4), %s1119_s7, 4 }
  0x19   : > { %s751_s24 = sshll.u32 %s332_s23, 2  ;;  %384 = vmatpush.bf16.msra.mxu0 %v815_v2  ;;  %463 = vmatpush.bf16.msra.mxu1 %v823_v3  ;;  %v932_v21 = vld [vmem:[%s1226_s6] ss:$0 sm:$0xff]  ;;  %p520_p11 = scmp.lt.s32.totalorder (%p1131_p4), %s519_s29, 2 }
  0x1a   : > { %s334_s12 = scalar_lea.vmem %s1220_s0, %s751_s24  ;;  %v930_v27 = vld [vmem:[%s1224_s4] ss:$0 sm:$0xff]  ;;  %s504_s24 = sld [smem:[#allocation2]] }
  0x1b   : > { %v814_v4 = vld [vmem:[%s334_s12] sm:$0xff] }
  0x1c   : > { %764 = vmatmul.msk.bf16.vlgmr.msra.gmra.mxu0 %vm373_vm0, %v814_v4  ;;  %v346_v19 = vld [vmem:[%s334_s12] sm:$0xff]   ;;  %s1186_s12 = scalar_lea.vmem (%p1131_p4), %s1228_s8, %s825_s28  }
  0x1d   : > { %464 = vmatpush.bf16.msra.mxu1 %v822_v5  ;;  %v488_v20 = vunpack.c.l.bf16 %v346_v19  ;;  %v489_v24 = vunpack.c.h.bf16 %v346_v19  ;;  %v931_v30 = vld [vmem:[%s1225_s5] ss:$0 sm:$0xff] }
  0x1f   : > { %v494_v22 = vmul.f32 %v932_v21, %v488_v20  ;;  %v495_v25 = vmul.f32 %v932_v21, %v489_v24 }
  0x20   : > { %v505_v39 = vstv %s504_s24 }
  0x21   : > { %465 = vmatpush.bf16.msra.mxu1 %v821_v6  ;;  %v496_v23 = vsel %vm373_vm0, %v494_v22, 0.0  ;;  %v499_v26 = vsel %vm373_vm0, %v495_v25, 0.0 }
  0x22   : > { %497 = vadd.xlane.f32.xlu1 %v496_v23 }
  0x25   : > { %466 = vmatpush.bf16.msra.mxu1 %v820_v7 }
  0x29   : > { %467 = vmatpush.bf16.msra.mxu1 %v819_v8 }
  0x2a   : > { %500 = vadd.xlane.f32.xlu1 %v499_v26 }
  0x2d   : > { %468 = vmatpush.bf16.msra.mxu1 %v818_v9 }
  0x31   : > { %469 = vmatpush.bf16.msra.mxu1 %v817_v10 }
  0x95   : > { %v498_v37 = vpop.xlane.xlu1 %497 }
  0x99   : > { %v386_v11 = vpop.f32.mrf.mxu0 }
  0x9a   : > { %v387_v13 = vadd.f32 %v929_v12, %v386_v11 }
  0x9c   : > { %v391_v16 = vmax.f32 %v387_v13, 0.0 }
  0x9d   : > { %v501_v42 = vpop.xlane.xlu1 %500 }
  0xa1   : > { %v388_v14 = vpop.f32.mrf.mxu0 }
  0xa2   : > { %v389_v15 = vadd.f32 %v929_v12, %v388_v14 }
  0xa4   : > { %v392_v17 = vmax.f32 %v389_v15, 0.0 }
  0xa6   : > { %v393_v18 = vpack.c.bf16 %v392_v17, %v391_v16 }
  0xa8   : > { %470 = vmatmul.bf16.vlgmr.msra.gmra.mxu1 %v393_v18 }
 0x125   : > { %v471_v28 = vpop.f32.mrf.mxu1 }
 0x126   : > { %v472_v29 = vadd.f32 %v930_v27, %v471_v28 }
 0x128   : > { %v476_v31 = vmax.f32 %v472_v29, 0.0 }
 0x12a   : > { %v482_v32 = vmul.f32 %v931_v30, %v476_v31 }
 0x12c   : > { %484 = vadd.xlane.f32.xlu0 %v482_v32 }
 0x12d   : > { %v473_v33 = vpop.f32.mrf.mxu1 }
 0x12e   : > { %v474_v34 = vadd.f32 %v930_v27, %v473_v33 }
 0x130   : > { %v477_v35 = vmax.f32 %v474_v34, 0.0 }
 0x132   : > { %v483_v36 = vmul.f32 %v931_v30, %v477_v35 }
 0x134   : > { %486 = vadd.xlane.f32.xlu0 %v483_v36 }
 0x19f   : > { %v485_v38 = vpop.xlane.xlu0 %484 }
 0x1a0   : > { %v502_v40 = vadd.f32 %v498_v37, %v485_v38 }
 0x1a2   : > { %v506_v41 = vadd.f32 %v505_v39, %v502_v40 }
 0x1a4   : > { %509 = vst.msk [vmem:[%s1175_s27] sm:$0xff] %vm508_vm1, %v506_v41 }
 0x1a7   : > { %v487_v43 = vpop.xlane.xlu0 %486 }
 0x1a8   : > { %v503_v44 = vadd.f32 %v501_v42, %v487_v43  ;;  %517 = sbr.rel (!%p1131_p4) target bundleno = 468 (0x1d4), region = 60 }
 0x1aa   : > { %v507_v45 = vadd.f32 %v505_v39, %v503_v44 }
 0x1ac   : > { %510 = vst.msk [vmem:[%s1175_s27 + $0x8] sm:$0xff] %vm508_vm1, %v507_v45 }
 0x1ad   : > { %s1234_s29 = smov (!%p520_p11, %s519_s29), 2 }
 0x1ae   : > { %s799_s15 = sshll.u32 %s1234_s29, 3 }
 0x1af   : > { %p802_p12 = scmp.eq.s32.totalorder %s799_s15, 0 }
 0x1b0   : > { %s1192_s16 = sshrl.u32 (!%p802_p12), %s1234_s29, 1 }
 0x1b1   : > { %528 = sbr.rel (%p802_p12) target bundleno = 468 (0x1d4), region = 64  ;;  %p803_p13 = scmp.le.s32.totalorder (!%p802_p12), %s1192_s16, 0 }
 0x1b6   : > { %690 = sbr.rel (%p803_p13) target bundleno = 451 (0x1c3), region = 141  ;;  %s1023_s7 = smov (!%p803_p13), %s1186_s12  }
 0x1b7   : > { %s1027_s14 = smov (!%p803_p13), %s1175_s27   ;;  %s1031_s22 = smov (!%p803_p13), 0  }
 0x1b8   : > { %s1035_s17 = smov (!%p803_p13), 0  }
 0x1bb LB: >> { %v593_v46 = vld [vmem:[%s1029_s14] sm:$0xff]  ;;  %v595_v47 = vld [vmem:[%s1029_s14 + $0x8] sm:$0xff]  ;;  %s597_s18 = sadd.s32 1, %s1033_s22  ;;  %s587_s17 = sadd.s32 1, %s1037_s17   ;;  %s1037_s17 = sphi %s1035_s17, %s587_s17   ;;  %s1033_s22 = sphi %s1031_s22, %s1032_s22   ;;  %s1029_s14 = sphi %s1027_s14, %s602_s14   ;;  %s1025_s7 = sphi %s1023_s7, %s603_s7  }
 0x1bc   : >> { %594 = vst [vmem:[%s1025_s7] sm:$0xff] %v593_v46  ;;  %p598_p0 = scmp.ge.s32.totalorder %s597_s18, %s1192_s16  ;;  %p586_p1 = scmp.ge.s32.totalorder %s587_s17, %s1192_s16 }
 0x1bd   : >> { %596 = vst [vmem:[%s1025_s7 + $0x8] sm:$0xff] %v595_v47 }
 0x1be   : >> { %s1236_s18 = smov (%p598_p0, %s597_s18), 0  ;;  %589 = sbr.rel (!%p586_p1) target bundleno = 443 (0x1bb), region = 147 }
 0x1bf   : >> { %s804_s19 = sshll.u32 %s1236_s18, 4  ;;  %s1032_s22 = smov %s1236_s18  }
 0x1c0   : >> { %s602_s14 = scalar_lea.vmem %s1175_s27, %s804_s19 [#allocation5]   ;;  %s603_s7 = scalar_lea.vmem %s1186_s12, %s804_s19  }
 0x1c3 PF: > { %s1202_s20 = sand.u32 1, %s1234_s29   ;;  %s826_s21 = sshll.u32 %s1192_s16, 4 }
 0x1c4   : > { %s608_s23 = scalar_lea.vmem %s1175_s27, %s826_s21 [#allocation5]   ;;  %s610_s24 = scalar_lea.vmem %s1186_s12, %s826_s21  }
 0x1c5   : > { %p809_p2 = scmp.le.s32.totalorder %s1202_s20, 0 }
 0x1c6   : > { %s1039_s25 = smov (!%p809_p2), %s610_s24   ;;  %s1043_s26 = smov (!%p809_p2), %s608_s23  }
 0x1c7   : > { %704 = sbr.rel (%p809_p2) target bundleno = 468 (0x1d4), region = 152  ;;  %s1047_s28 = smov (!%p809_p2), 0  }
 0x1c8   : > { %s1051_s9 = smov (!%p809_p2), 0  }
 0x1cc LB: >> { %v620_v48 = vld [vmem:[%s1045_s26] sm:$0xff]  ;;  %s622_s29 = sadd.s32 1, %s1049_s28  ;;  %s614_s9 = sadd.s32 1, %s1053_s9   ;;  %s1053_s9 = sphi %s1051_s9, %s614_s9   ;;  %s1049_s28 = sphi %s1047_s28, %s1048_s28   ;;  %s1045_s26 = sphi %s1043_s26, %s627_s26   ;;  %s1041_s25 = sphi %s1039_s25, %s628_s25  }
 0x1cd   : >> { %621 = vst [vmem:[%s1041_s25] sm:$0xff] %v620_v48  ;;  %p623_p3 = scmp.ge.s32.totalorder %s622_s29, %s1202_s20  ;;  %p613_p4 = scmp.ge.s32.totalorder %s614_s9, %s1202_s20 }
 0x1cf   : >> { %s1238_s29 = smov (%p623_p3, %s622_s29), 0  ;;  %616 = sbr.rel (!%p613_p4) target bundleno = 460 (0x1cc), region = 158 }
 0x1d0   : >> { %s810_s27 = sshll.u32 %s1238_s29, 3  ;;  %s1048_s28 = smov %s1238_s29  }
 0x1d1   : >> { %s627_s26 = scalar_lea.vmem %s608_s23, %s810_s27 [#allocation5]   ;;  %s628_s25 = scalar_lea.vmem %s610_s24, %s810_s27  }
 0x1d4 PF: > { %p17_p5 = scmp.ge.s32.totalorder %s1121_s10, 5   ;;  %s1230_s29 = smov %s1017_s30 }
 0x1d5   : > { %s1231_s30 = smov %s1129_s13  ;;  %s1232_s9 = smov %s1121_s10 }
 0x1d6   :  { %19 = sbr.rel (!%p17_p5) target bundleno = 4 (0x4), region = 169 }
 0x1db   :  { %644 = vsyncpa [#allocation4], 1 }
 0x1dc   :  { %646 = vsyncpa [#allocation4 + $0x1], 1 }

</bundles_post_ra>
